<compile_context>
chip_gen: v5e
topology: v5e:2x2
jax: 0.10.0
libtpu: 0.0.40
codegen_flags: <defaults>
</compile_context>

<pallas_src>
import jax
import jax.numpy as jnp
from jax.experimental import pallas as pl
from jax.experimental.pallas import tpu as pltpu


def _round_up(x: int, m: int) -> int:
    return (x + m - 1) // m * m


# -----------------------------------------------------------------------------
# Fused two-net MLP kernel (matmul chain + per-net LayerNorm + activation + head)
# -----------------------------------------------------------------------------
def _make_fused_kernel(num_hidden_layers: int, layer_norm: bool, activation: str,
                       hidden_dim: int, padded_half: int, use_blockdiag: bool,
                       eps: float = 1e-5):
    if activation == "relu":
        act = lambda v: jnp.maximum(v, 0.0)
    elif activation == "tanh":
        act = jnp.tanh
    else:
        raise ValueError(f"unsupported activation: {activation}")

    H = hidden_dim          # real per-net hidden width
    Hp = padded_half        # padded per-net width (net0 lanes [0,Hp), net1 lanes [Hp,2Hp))
    W = 2 * Hp              # fused lane width (multiple of 128)
    inv_h = 1.0 / float(H)

    def kernel(*refs):
        # ref order: x, [mean_mat], {w_i, b_i, [gamma_i, beta_i]} * L, w_head, b_head, out
        it = iter(refs)
        x_ref = next(it)
        m_ref = next(it) if layer_norm else None

        h = x_ref[...]
        if h.dtype != jnp.float32:
            h = h.astype(jnp.float32)

        if layer_norm:
            # Static per-lane metadata for the fused (two-net, padded) layout.
            lane = jax.lax.broadcasted_iota(jnp.int32, (1, W), 1)
            in_net0 = lane < Hp
            real = jnp.logical_or(lane < H,
                                  jnp.logical_and(lane >= Hp, lane < Hp + H))
            real_f = real.astype(jnp.float32)

        for li in range(num_hidden_layers):
            w_ref = next(it)
            b_ref = next(it)
            if li == 0 or use_blockdiag:
                # Single fused matmul over both nets (layer 1 shares x; deeper
                # layers use a block-diagonal weight so the nets never mix).
                h = jnp.dot(h, w_ref[...],
                            preferred_element_type=jnp.float32) + b_ref[...]
            else:
                # Wide nets: two per-net dots on the 128-aligned lane halves
                # (skips the structural zeros of a block-diagonal matmul).
                h0 = jnp.dot(h[:, :Hp], w_ref[0],
                             preferred_element_type=jnp.float32)
                h1 = jnp.dot(h[:, Hp:], w_ref[1],
                             preferred_element_type=jnp.float32)
                h = jnp.concatenate([h0, h1], axis=-1) + b_ref[...]

            if layer_norm:
                g_ref = next(it)
                be_ref = next(it)
                # Per-net mean via MXU (block-constant averaging matrix), already
                # broadcast per lane; padded lanes get exactly 0.
                mean_b = jnp.dot(h, m_ref[...], preferred_element_type=jnp.float32)
                centered = (h - mean_b) * real_f
                sq = centered * centered
                # Two narrow per-net variance reductions (XLU), then narrow rsqrt
                # on (tile_b, 1) columns (EUP), then a cheap broadcast select.
                var0 = jnp.sum(jnp.where(in_net0, sq, 0.0), axis=-1, keepdims=True)
                var1 = jnp.sum(jnp.where(in_net0, 0.0, sq), axis=-1, keepdims=True)
                inv0 = jax.lax.rsqrt(var0 * inv_h + eps)
                inv1 = jax.lax.rsqrt(var1 * inv_h + eps)
                inv_std = jnp.where(in_net0, inv0, inv1)
                # gamma/beta are zero on padded lanes, so padding stays exactly 0.
                h = centered * inv_std * g_ref[...] + be_ref[...]

            h = act(h)   # relu(0)=tanh(0)=0 -> padded lanes remain 0

        w_o_ref = next(it)
        b_o_ref = next(it)
        out_ref = next(it)
        out = jnp.dot(h, w_o_ref[...],
                      preferred_element_type=jnp.float32) + b_o_ref[...]
        out_ref[...] = out.astype(out_ref.dtype)

    return kernel


# -----------------------------------------------------------------------------
# Build fused (critic || critic_target) parameters, lane-padded
# -----------------------------------------------------------------------------
def build_fused_params(critic_params, target_params, layer_norm: bool,
                       hidden_dim: int, padded_half: int, out_lanes: int = 8):
    H, Hp = hidden_dim, padded_half
    W = 2 * Hp
    use_blockdiag = H <= 64          # block-diag fusion only when it is FLOP-cheap
    L = len(critic_params) - 1
    layers = []

    def _lane_concat_vec(vc, vt):
        return (jnp.zeros((1, W), jnp.float32)
                .at[:, :H].set(vc).at[:, Hp:Hp + H].set(vt))

    # Layer 1: x is shared -> concatenate output columns.
    wc, wt = critic_params[0]["w"], target_params[0]["w"]
    F = wc.shape[0]
    w1 = jnp.zeros((F, W), jnp.float32).at[:, :H].set(wc).at[:, Hp:Hp + H].set(wt)
    layer = {"w": w1, "b": _lane_concat_vec(critic_params[0]["b"], target_params[0]["b"])}
    if layer_norm:
        layer["gamma"] = _lane_concat_vec(critic_params[0]["gamma"], target_params[0]["gamma"])
        layer["beta"] = _lane_concat_vec(critic_params[0]["beta"], target_params[0]["beta"])
    layers.append(layer)

    # Hidden layers 2..L.
    for li in range(1, L):
        wc, wt = critic_params[li]["w"], target_params[li]["w"]
        if use_blockdiag:
            w = (jnp.zeros((W, W), jnp.float32)
                 .at[:H, :H].set(wc).at[Hp:Hp + H, Hp:Hp + H].set(wt))
        else:
            w = (jnp.zeros((2, Hp, Hp), jnp.float32)
                 .at[0, :H, :H].set(wc).at[1, :H, :H].set(wt))
        layer = {"w": w, "b": _lane_concat_vec(critic_params[li]["b"], target_params[li]["b"])}
        if layer_norm:
            layer["gamma"] = _lane_concat_vec(critic_params[li]["gamma"], target_params[li]["gamma"])
            layer["beta"] = _lane_concat_vec(critic_params[li]["beta"], target_params[li]["beta"])
        layers.append(layer)

    # Head: lane 0 = critic value, lane 1 = target value, lanes 2..7 zero.
    wc, wt = critic_params[-1]["w"], target_params[-1]["w"]
    w_head = (jnp.zeros((W, out_lanes), jnp.float32)
              .at[:H, 0:1].set(wc).at[Hp:Hp + H, 1:2].set(wt))
    b_head = (jnp.zeros((1, out_lanes), jnp.float32)
              .at[:, 0:1].set(critic_params[-1]["b"]).at[:, 1:2].set(target_params[-1]["b"]))
    head = {"w": w_head, "b": b_head}

    mean_mat = None
    if layer_norm:
        inv_h = 1.0 / float(H)
        mean_mat = (jnp.zeros((W, W), jnp.float32)
                    .at[:H, :H].set(inv_h)
                    .at[Hp:Hp + H, Hp:Hp + H].set(inv_h))

    return {"layers": layers, "head": head, "mean_mat": mean_mat,
            "use_blockdiag": use_blockdiag}


# -----------------------------------------------------------------------------
# pallas_call wrapper: batch grid, resident weights, narrow output slab
# -----------------------------------------------------------------------------
def _pick_tile_b(B: int, W: int) -> int:
    # Large tiles to amortize the ~0.35 us/step overhead; keep multiple of 8 and
    # well under the 32 MiB scoped VMEM limit (portable to v7x's 64 MiB VMEM).
    cap = 4096 if W <= 128 else 2048
    if B <= 8:
        return B
    # >= 2 grid steps whenever the batch can be split -> both v7x TensorCores work.
    tile = _round_up((B + 1) // 2, 8)
    return max(8, min(cap, tile))


def fused_critic_forward(x, fused, *, layer_norm: bool, activation: str,
                         hidden_dim: int, padded_half: int):
    B, F = x.shape
    layers = fused["layers"]
    head = fused["head"]
    use_blockdiag = fused["use_blockdiag"]
    out_lanes = head["w"].shape[1]
    L = len(layers)
    Hp = padded_half
    W = 2 * Hp

    tile_b = _pick_tile_b(B, W)
    grid = (pl.cdiv(B, tile_b),)

    kernel = _make_fused_kernel(L, layer_norm, activation, hidden_dim,
                                padded_half, use_blockdiag)

    def resident(shape):
        # Weights: constant block index across the batch grid -> stay in VMEM.
        return pl.BlockSpec(shape, lambda i, _n=len(shape): (0,) * _n)

    operands = [x]
    in_specs = [pl.BlockSpec((tile_b, F), lambda i: (i, 0))]
    if layer_norm:
        operands.append(fused["mean_mat"])
        in_specs.append(resident(fused["mean_mat"].shape))
    for layer in layers:
        operands += [layer["w"], layer["b"]]
        in_specs += [resident(layer["w"].shape), resident(layer["b"].shape)]
        if layer_norm:
            operands += [layer["gamma"], layer["beta"]]
            in_specs += [resident(layer["gamma"].shape), resident(layer["beta"].shape)]
    operands += [head["w"], head["b"]]
    in_specs += [resident(head["w"].shape), resident(head["b"].shape)]
    out_specs = pl.BlockSpec((tile_b, out_lanes), lambda i: (i, 0))

    # Advisory cost estimate so XLA schedules around the small custom call.
    flops = 2 * B * F * W                               # layer 1
    if use_blockdiag:
        flops += 2 * B * W * W * max(L - 1, 0)          # fused block-diag layers
    else:
        flops += 2 * B * 2 * Hp * Hp * max(L - 1, 0)    # two per-net dots / layer
    flops += 2 * B * W * out_lanes                      # head
    if layer_norm:
        flops += 2 * B * W * W * L                      # MXU mean matmuls
    transcendentals = B * W * L if activation == "tanh" else 0
    if layer_norm:
        transcendentals += 2 * B * L                    # narrow per-net rsqrt
    param_bytes = 4 * sum(int(p.size) for p in operands[1:])
    bytes_accessed = 4 * (B * F + B * out_lanes) + param_bytes

    slab = pl.pallas_call(
        kernel,
        out_shape=jax.ShapeDtypeStruct((B, out_lanes), jnp.float32),
        grid=grid,
        in_specs=in_specs,
        out_specs=out_specs,
        compiler_params=pltpu.CompilerParams(
            dimension_semantics=("parallel",),      # v7x: shard batch grid across 2 TCs
            vmem_limit_bytes=32 * 1024 * 1024,      # portable to v7x's smaller VMEM
        ),
        cost_estimate=pl.CostEstimate(
            flops=int(flops),
            transcendentals=int(transcendentals),
            bytes_accessed=int(bytes_accessed),
        ),
    )(*operands)
    return slab


# -----------------------------------------------------------------------------
# Parameter construction (deterministic, synthetic)
# -----------------------------------------------------------------------------
def init_mlp_params(key, in_features, out_features, hidden_dim, layers, layer_norm):
    params = []
    fan_in = in_features
    for _ in range(layers):
        key, kw, kb = jax.random.split(key, 3)
        layer = {
            "w": jax.random.normal(kw, (fan_in, hidden_dim), jnp.float32)
                 * (1.0 / jnp.sqrt(float(fan_in))),
            "b": jax.random.normal(kb, (1, hidden_dim), jnp.float32) * 0.01,
        }
        if layer_norm:
            layer["gamma"] = jnp.ones((1, hidden_dim), jnp.float32)
            layer["beta"] = jnp.zeros((1, hidden_dim), jnp.float32)
        params.append(layer)
        fan_in = hidden_dim
    key, kw, kb = jax.random.split(key, 3)
    params.append({
        "w": jax.random.normal(kw, (fan_in, out_features), jnp.float32)
             * (1.0 / jnp.sqrt(float(fan_in))),
        "b": jax.random.normal(kb, (1, out_features), jnp.float32) * 0.01,
    })
    return params


# -----------------------------------------------------------------------------
# Critic module equivalent
# -----------------------------------------------------------------------------
class CriticPallas:
    def __init__(self, perceptual_features, latent_goal_features, plan_features,
                 hidden_dim, layers, layer_norm, activation, key):
        in_features = perceptual_features + latent_goal_features + plan_features
        k_critic, k_target = jax.random.split(key)
        self.layer_norm = layer_norm
        self.activation = activation
        self.hidden_dim = hidden_dim
        self.padded_half = _round_up(hidden_dim, 64)   # 2*padded_half % 128 == 0
        self.critic_params = init_mlp_params(
            k_critic, in_features, 1, hidden_dim, layers, layer_norm)
        # critic_target has its own (frozen) parameters, independently initialized.
        self.critic_target_params = init_mlp_params(
            k_target, in_features, 1, hidden_dim, layers, layer_norm)
        self._refresh_fused()

    def _refresh_fused(self):
        self.fused_params = build_fused_params(
            self.critic_params, self.critic_target_params,
            self.layer_norm, self.hidden_dim, self.padded_half)

    def __call__(self, x):
        slab = fused_critic_forward(
            x, self.fused_params,
            layer_norm=self.layer_norm, activation=self.activation,
            hidden_dim=self.hidden_dim, padded_half=self.padded_half)
        state_values = slab[:, 0:1]
        target_values = slab[:, 1:2]
        return state_values, target_values

    def update_critic_target(self):
        # Equivalent of load_state_dict(critic) on the target net.
        self.critic_target_params = jax.tree_util.tree_map(
            lambda a: a, self.critic_params)
        self._refresh_fused()


# -----------------------------------------------------------------------------
# Pure-JAX reference for correctness checking
# -----------------------------------------------------------------------------
def mlp_forward_ref(x, params, *, layer_norm, activation, eps=1e-5):
    act = {"relu": lambda v: jnp.maximum(v, 0.0), "tanh": jnp.tanh}[activation]
    h = x.astype(jnp.float32)
    for layer in params[:-1]:
        h = h @ layer["w"] + layer["b"]
        if layer_norm:
            mean = jnp.mean(h, axis=-1, keepdims=True)
            var = jnp.mean(jnp.square(h - mean), axis=-1, keepdims=True)
            h = (h - mean) * jax.lax.rsqrt(var + eps) * layer["gamma"] + layer["beta"]
        h = act(h)
    return h @ params[-1]["w"] + params[-1]["b"]


if __name__ == "__main__":
    # Small, forward-consistent shapes.
    batch = 8
    perceptual_features = 16
    latent_goal_features = 8
    plan_features = 8
    hidden_dim = 32
    layers = 2
    layer_norm = True
    activation = "relu"

    key = jax.random.PRNGKey(0)
    k_params, k_x = jax.random.split(key)

    critic = CriticPallas(perceptual_features, latent_goal_features, plan_features,
                          hidden_dim, layers, layer_norm, activation, k_params)

    in_features = perceptual_features + latent_goal_features + plan_features
    x = jax.random.normal(k_x, (batch, in_features), jnp.float32)

    state_values, target_values = critic(x)
    jax.block_until_ready((state_values, target_values))

    # Cross-check against pure-JAX per-net reference.
    ref_state = mlp_forward_ref(x, critic.critic_params,
                                layer_norm=layer_norm, activation=activation)
    ref_target = mlp_forward_ref(x, critic.critic_target_params,
                                 layer_norm=layer_norm, activation=activation)
    assert state_values.shape == (batch, 1) and target_values.shape == (batch, 1)
    assert jnp.allclose(state_values, ref_state, atol=1e-4, rtol=1e-4)
    assert jnp.allclose(target_values, ref_target, atol=1e-4, rtol=1e-4)

    print("KERNEL_OK")
</pallas_src>

<mosaic_0001>
module attributes {stable_mosaic.version = 11 : i64} {
  func.func @kernel(%arg0: i32, %arg1: memref<8x32xf32, #tpu.memory_space<vmem>>, %arg2: memref<128x128xf32, #tpu.memory_space<vmem>>, %arg3: memref<32x128xf32, #tpu.memory_space<vmem>>, %arg4: memref<1x128xf32, #tpu.memory_space<vmem>>, %arg5: memref<1x128xf32, #tpu.memory_space<vmem>>, %arg6: memref<1x128xf32, #tpu.memory_space<vmem>>, %arg7: memref<128x128xf32, #tpu.memory_space<vmem>>, %arg8: memref<1x128xf32, #tpu.memory_space<vmem>>, %arg9: memref<1x128xf32, #tpu.memory_space<vmem>>, %arg10: memref<1x128xf32, #tpu.memory_space<vmem>>, %arg11: memref<128x8xf32, #tpu.memory_space<vmem>>, %arg12: memref<1x8xf32, #tpu.memory_space<vmem>>, %arg13: memref<8x8xf32, #tpu.memory_space<vmem>>) attributes {dimension_semantics = [#tpu.dimension_semantics<parallel>], iteration_bounds = array<i64: 1>, scalar_prefetch = 0 : i64, scratch_operands = 0 : i64, tpu.core_type = #tpu.core_type<tc>, window_params = [{transform_indices = @transform_0, window_bounds = array<i64: 8, 32>}, {pipeline_mode = #tpu.pipeline_mode<synchronous>, transform_indices = @transform_1, window_bounds = array<i64: 128, 128>}, {pipeline_mode = #tpu.pipeline_mode<synchronous>, transform_indices = @transform_2, window_bounds = array<i64: 32, 128>}, {pipeline_mode = #tpu.pipeline_mode<synchronous>, transform_indices = @transform_3, window_bounds = array<i64: 1, 128>}, {pipeline_mode = #tpu.pipeline_mode<synchronous>, transform_indices = @transform_4, window_bounds = array<i64: 1, 128>}, {pipeline_mode = #tpu.pipeline_mode<synchronous>, transform_indices = @transform_5, window_bounds = array<i64: 1, 128>}, {pipeline_mode = #tpu.pipeline_mode<synchronous>, transform_indices = @transform_6, window_bounds = array<i64: 128, 128>}, {pipeline_mode = #tpu.pipeline_mode<synchronous>, transform_indices = @transform_7, window_bounds = array<i64: 1, 128>}, {pipeline_mode = #tpu.pipeline_mode<synchronous>, transform_indices = @transform_8, window_bounds = array<i64: 1, 128>}, {pipeline_mode = #tpu.pipeline_mode<synchronous>, transform_indices = @transform_9, window_bounds = array<i64: 1, 128>}, {pipeline_mode = #tpu.pipeline_mode<synchronous>, transform_indices = @transform_10, window_bounds = array<i64: 128, 8>}, {pipeline_mode = #tpu.pipeline_mode<synchronous>, transform_indices = @transform_11, window_bounds = array<i64: 1, 8>}, {transform_indices = @transform_12, window_bounds = array<i64: 8, 8>}]} {
    %c0 = arith.constant 0 : index
    %c0_0 = arith.constant 0 : index
    %0 = vector.load %arg1[%c0, %c0_0] : memref<8x32xf32, #tpu.memory_space<vmem>>, vector<8x32xf32>
    %1 = tpu.iota {dimensions = array<i32: 1>} : vector<1x128xi32>
    %c64_i32 = arith.constant 64 : i32
    %2 = vector.broadcast %c64_i32 : i32 to vector<1x128xi32>
    %3 = arith.cmpi slt, %1, %2 : vector<1x128xi32>
    %c32_i32 = arith.constant 32 : i32
    %4 = vector.broadcast %c32_i32 : i32 to vector<1x128xi32>
    %5 = arith.cmpi slt, %1, %4 : vector<1x128xi32>
    %c64_i32_1 = arith.constant 64 : i32
    %6 = vector.broadcast %c64_i32_1 : i32 to vector<1x128xi32>
    %7 = arith.cmpi sge, %1, %6 : vector<1x128xi32>
    %c96_i32 = arith.constant 96 : i32
    %8 = vector.broadcast %c96_i32 : i32 to vector<1x128xi32>
    %9 = arith.cmpi slt, %1, %8 : vector<1x128xi32>
    %10 = arith.andi %7, %9 : vector<1x128xi1>
    %11 = arith.ori %5, %10 : vector<1x128xi1>
    %12 = arith.extui %11 : vector<1x128xi1> to vector<1x128xi32>
    %13 = arith.sitofp %12 : vector<1x128xi32> to vector<1x128xf32>
    %c0_2 = arith.constant 0 : index
    %c0_3 = arith.constant 0 : index
    %14 = vector.load %arg3[%c0_2, %c0_3] : memref<32x128xf32, #tpu.memory_space<vmem>>, vector<32x128xf32>
    %cst = arith.constant dense<0.000000e+00> : vector<8x128xf32>
    %15 = tpu.matmul %0, %14, %cst {dimension_numbers = #tpu.dot_dimension_numbers<[1], [0], [0], [1], [0, 0, 1, 1], [], []>} : vector<8x32xf32>, vector<32x128xf32>, vector<8x128xf32> -> vector<8x128xf32>
    %c0_4 = arith.constant 0 : index
    %c0_5 = arith.constant 0 : index
    %16 = vector.load %arg4[%c0_4, %c0_5] : memref<1x128xf32, #tpu.memory_space<vmem>>, vector<1x128xf32>
    %17 = vector.broadcast %16 : vector<1x128xf32> to vector<8x128xf32>
    %18 = arith.addf %15, %17 : vector<8x128xf32>
    %c0_6 = arith.constant 0 : index
    %c0_7 = arith.constant 0 : index
    %19 = vector.load %arg2[%c0_6, %c0_7] : memref<128x128xf32, #tpu.memory_space<vmem>>, vector<128x128xf32>
    %cst_8 = arith.constant dense<0.000000e+00> : vector<8x128xf32>
    %20 = tpu.matmul %18, %19, %cst_8 {dimension_numbers = #tpu.dot_dimension_numbers<[1], [0], [0], [1], [0, 0, 1, 1], [], []>} : vector<8x128xf32>, vector<128x128xf32>, vector<8x128xf32> -> vector<8x128xf32>
    %21 = arith.subf %18, %20 : vector<8x128xf32>
    %22 = vector.broadcast %13 : vector<1x128xf32> to vector<8x128xf32>
    %23 = arith.mulf %21, %22 : vector<8x128xf32>
    %24 = arith.mulf %23, %23 : vector<8x128xf32>
    %cst_9 = arith.constant 0.000000e+00 : f32
    %25 = vector.shape_cast %3 : vector<1x128xi1> to vector<1x128xi1>
    %26 = vector.broadcast %25 : vector<1x128xi1> to vector<8x128xi1>
    %27 = vector.broadcast %cst_9 : f32 to vector<8x128xf32>
    %28 = arith.select %26, %24, %27 : vector<8x128xi1>, vector<8x128xf32>
    %cst_10 = arith.constant dense<0.000000e+00> : vector<8xf32>
    %29 = vector.multi_reduction <add>, %28, %cst_10 [1] : vector<8x128xf32> to vector<8xf32>
    %30 = vector.shape_cast %29 : vector<8xf32> to vector<8x1xf32>
    %cst_11 = arith.constant 0.000000e+00 : f32
    %31 = vector.shape_cast %3 : vector<1x128xi1> to vector<1x128xi1>
    %32 = vector.broadcast %31 : vector<1x128xi1> to vector<8x128xi1>
    %33 = vector.broadcast %cst_11 : f32 to vector<8x128xf32>
    %34 = arith.select %32, %33, %24 : vector<8x128xi1>, vector<8x128xf32>
    %cst_12 = arith.constant dense<0.000000e+00> : vector<8xf32>
    %35 = vector.multi_reduction <add>, %34, %cst_12 [1] : vector<8x128xf32> to vector<8xf32>
    %36 = vector.shape_cast %35 : vector<8xf32> to vector<8x1xf32>
    %cst_13 = arith.constant 3.125000e-02 : f32
    %37 = vector.broadcast %cst_13 : f32 to vector<8x1xf32>
    %38 = arith.mulf %30, %37 : vector<8x1xf32>
    %cst_14 = arith.constant 9.99999974E-6 : f32
    %39 = vector.broadcast %cst_14 : f32 to vector<8x1xf32>
    %40 = arith.addf %38, %39 : vector<8x1xf32>
    %41 = math.rsqrt %40 : vector<8x1xf32>
    %cst_15 = arith.constant 3.125000e-02 : f32
    %42 = vector.broadcast %cst_15 : f32 to vector<8x1xf32>
    %43 = arith.mulf %36, %42 : vector<8x1xf32>
    %cst_16 = arith.constant 9.99999974E-6 : f32
    %44 = vector.broadcast %cst_16 : f32 to vector<8x1xf32>
    %45 = arith.addf %43, %44 : vector<8x1xf32>
    %46 = math.rsqrt %45 : vector<8x1xf32>
    %47 = vector.shape_cast %3 : vector<1x128xi1> to vector<1x128xi1>
    %48 = vector.broadcast %47 : vector<1x128xi1> to vector<8x128xi1>
    %49 = vector.shape_cast %41 : vector<8x1xf32> to vector<8x1xf32>
    %50 = vector.broadcast %49 : vector<8x1xf32> to vector<8x128xf32>
    %51 = vector.shape_cast %46 : vector<8x1xf32> to vector<8x1xf32>
    %52 = vector.broadcast %51 : vector<8x1xf32> to vector<8x128xf32>
    %53 = arith.select %48, %50, %52 : vector<8x128xi1>, vector<8x128xf32>
    %54 = arith.mulf %23, %53 : vector<8x128xf32>
    %c0_17 = arith.constant 0 : index
    %c0_18 = arith.constant 0 : index
    %55 = vector.load %arg5[%c0_17, %c0_18] : memref<1x128xf32, #tpu.memory_space<vmem>>, vector<1x128xf32>
    %56 = vector.broadcast %55 : vector<1x128xf32> to vector<8x128xf32>
    %57 = arith.mulf %54, %56 : vector<8x128xf32>
    %c0_19 = arith.constant 0 : index
    %c0_20 = arith.constant 0 : index
    %58 = vector.load %arg6[%c0_19, %c0_20] : memref<1x128xf32, #tpu.memory_space<vmem>>, vector<1x128xf32>
    %59 = vector.broadcast %58 : vector<1x128xf32> to vector<8x128xf32>
    %60 = arith.addf %57, %59 : vector<8x128xf32>
    %cst_21 = arith.constant 0.000000e+00 : f32
    %61 = vector.broadcast %cst_21 : f32 to vector<8x128xf32>
    %62 = arith.maximumf %60, %61 : vector<8x128xf32>
    %c0_22 = arith.constant 0 : index
    %c0_23 = arith.constant 0 : index
    %63 = vector.load %arg7[%c0_22, %c0_23] : memref<128x128xf32, #tpu.memory_space<vmem>>, vector<128x128xf32>
    %cst_24 = arith.constant dense<0.000000e+00> : vector<8x128xf32>
    %64 = tpu.matmul %62, %63, %cst_24 {dimension_numbers = #tpu.dot_dimension_numbers<[1], [0], [0], [1], [0, 0, 1, 1], [], []>} : vector<8x128xf32>, vector<128x128xf32>, vector<8x128xf32> -> vector<8x128xf32>
    %c0_25 = arith.constant 0 : index
    %c0_26 = arith.constant 0 : index
    %65 = vector.load %arg8[%c0_25, %c0_26] : memref<1x128xf32, #tpu.memory_space<vmem>>, vector<1x128xf32>
    %66 = vector.broadcast %65 : vector<1x128xf32> to vector<8x128xf32>
    %67 = arith.addf %64, %66 : vector<8x128xf32>
    %c0_27 = arith.constant 0 : index
    %c0_28 = arith.constant 0 : index
    %68 = vector.load %arg2[%c0_27, %c0_28] : memref<128x128xf32, #tpu.memory_space<vmem>>, vector<128x128xf32>
    %cst_29 = arith.constant dense<0.000000e+00> : vector<8x128xf32>
    %69 = tpu.matmul %67, %68, %cst_29 {dimension_numbers = #tpu.dot_dimension_numbers<[1], [0], [0], [1], [0, 0, 1, 1], [], []>} : vector<8x128xf32>, vector<128x128xf32>, vector<8x128xf32> -> vector<8x128xf32>
    %70 = arith.subf %67, %69 : vector<8x128xf32>
    %71 = vector.broadcast %13 : vector<1x128xf32> to vector<8x128xf32>
    %72 = arith.mulf %70, %71 : vector<8x128xf32>
    %73 = arith.mulf %72, %72 : vector<8x128xf32>
    %cst_30 = arith.constant 0.000000e+00 : f32
    %74 = vector.shape_cast %3 : vector<1x128xi1> to vector<1x128xi1>
    %75 = vector.broadcast %74 : vector<1x128xi1> to vector<8x128xi1>
    %76 = vector.broadcast %cst_30 : f32 to vector<8x128xf32>
    %77 = arith.select %75, %73, %76 : vector<8x128xi1>, vector<8x128xf32>
    %cst_31 = arith.constant dense<0.000000e+00> : vector<8xf32>
    %78 = vector.multi_reduction <add>, %77, %cst_31 [1] : vector<8x128xf32> to vector<8xf32>
    %79 = vector.shape_cast %78 : vector<8xf32> to vector<8x1xf32>
    %cst_32 = arith.constant 0.000000e+00 : f32
    %80 = vector.shape_cast %3 : vector<1x128xi1> to vector<1x128xi1>
    %81 = vector.broadcast %80 : vector<1x128xi1> to vector<8x128xi1>
    %82 = vector.broadcast %cst_32 : f32 to vector<8x128xf32>
    %83 = arith.select %81, %82, %73 : vector<8x128xi1>, vector<8x128xf32>
    %cst_33 = arith.constant dense<0.000000e+00> : vector<8xf32>
    %84 = vector.multi_reduction <add>, %83, %cst_33 [1] : vector<8x128xf32> to vector<8xf32>
    %85 = vector.shape_cast %84 : vector<8xf32> to vector<8x1xf32>
    %cst_34 = arith.constant 3.125000e-02 : f32
    %86 = vector.broadcast %cst_34 : f32 to vector<8x1xf32>
    %87 = arith.mulf %79, %86 : vector<8x1xf32>
    %cst_35 = arith.constant 9.99999974E-6 : f32
    %88 = vector.broadcast %cst_35 : f32 to vector<8x1xf32>
    %89 = arith.addf %87, %88 : vector<8x1xf32>
    %90 = math.rsqrt %89 : vector<8x1xf32>
    %cst_36 = arith.constant 3.125000e-02 : f32
    %91 = vector.broadcast %cst_36 : f32 to vector<8x1xf32>
    %92 = arith.mulf %85, %91 : vector<8x1xf32>
    %cst_37 = arith.constant 9.99999974E-6 : f32
    %93 = vector.broadcast %cst_37 : f32 to vector<8x1xf32>
    %94 = arith.addf %92, %93 : vector<8x1xf32>
    %95 = math.rsqrt %94 : vector<8x1xf32>
    %96 = vector.shape_cast %3 : vector<1x128xi1> to vector<1x128xi1>
    %97 = vector.broadcast %96 : vector<1x128xi1> to vector<8x128xi1>
    %98 = vector.shape_cast %90 : vector<8x1xf32> to vector<8x1xf32>
    %99 = vector.broadcast %98 : vector<8x1xf32> to vector<8x128xf32>
    %100 = vector.shape_cast %95 : vector<8x1xf32> to vector<8x1xf32>
    %101 = vector.broadcast %100 : vector<8x1xf32> to vector<8x128xf32>
    %102 = arith.select %97, %99, %101 : vector<8x128xi1>, vector<8x128xf32>
    %103 = arith.mulf %72, %102 : vector<8x128xf32>
    %c0_38 = arith.constant 0 : index
    %c0_39 = arith.constant 0 : index
    %104 = vector.load %arg9[%c0_38, %c0_39] : memref<1x128xf32, #tpu.memory_space<vmem>>, vector<1x128xf32>
    %105 = vector.broadcast %104 : vector<1x128xf32> to vector<8x128xf32>
    %106 = arith.mulf %103, %105 : vector<8x128xf32>
    %c0_40 = arith.constant 0 : index
    %c0_41 = arith.constant 0 : index
    %107 = vector.load %arg10[%c0_40, %c0_41] : memref<1x128xf32, #tpu.memory_space<vmem>>, vector<1x128xf32>
    %108 = vector.broadcast %107 : vector<1x128xf32> to vector<8x128xf32>
    %109 = arith.addf %106, %108 : vector<8x128xf32>
    %cst_42 = arith.constant 0.000000e+00 : f32
    %110 = vector.broadcast %cst_42 : f32 to vector<8x128xf32>
    %111 = arith.maximumf %109, %110 : vector<8x128xf32>
    %c0_43 = arith.constant 0 : index
    %c0_44 = arith.constant 0 : index
    %112 = vector.load %arg11[%c0_43, %c0_44] : memref<128x8xf32, #tpu.memory_space<vmem>>, vector<128x8xf32>
    %cst_45 = arith.constant dense<0.000000e+00> : vector<8x8xf32>
    %113 = tpu.matmul %111, %112, %cst_45 {dimension_numbers = #tpu.dot_dimension_numbers<[1], [0], [0], [1], [0, 0, 1, 1], [], []>} : vector<8x128xf32>, vector<128x8xf32>, vector<8x8xf32> -> vector<8x8xf32>
    %c0_46 = arith.constant 0 : index
    %c0_47 = arith.constant 0 : index
    %114 = vector.load %arg12[%c0_46, %c0_47] : memref<1x8xf32, #tpu.memory_space<vmem>>, vector<1x8xf32>
    %115 = vector.broadcast %114 : vector<1x8xf32> to vector<8x8xf32>
    %116 = arith.addf %113, %115 : vector<8x8xf32>
    %c0_48 = arith.constant 0 : index
    %c0_49 = arith.constant 0 : index
    %117 = vector.load %arg13[%c0_48, %c0_49] : memref<8x8xf32, #tpu.memory_space<vmem>>, vector<8x8xf32>
    tpu.vector_store %arg13[%c0_48, %c0_49], %116 {strides = array<i32>} : memref<8x8xf32, #tpu.memory_space<vmem>>, vector<8x8xf32>,
    return
  }
  func.func @transform_0(%arg0: i32) -> (i32, i32) {
    %c0_i32 = arith.constant 0 : i32
    %c0_i32_0 = arith.constant 0 : i32
    return %arg0, %c0_i32 : i32, i32
  }
  func.func @transform_1(%arg0: i32) -> (i32, i32) {
    %c0_i32 = arith.constant 0 : i32
    %c0_i32_0 = arith.constant 0 : i32
    %c0_i32_1 = arith.constant 0 : i32
    return %c0_i32, %c0_i32_0 : i32, i32
  }
  func.func @transform_2(%arg0: i32) -> (i32, i32) {
    %c0_i32 = arith.constant 0 : i32
    %c0_i32_0 = arith.constant 0 : i32
    %c0_i32_1 = arith.constant 0 : i32
    return %c0_i32, %c0_i32_0 : i32, i32
  }
  func.func @transform_3(%arg0: i32) -> (i32, i32) {
    %c0_i32 = arith.constant 0 : i32
    %c0_i32_0 = arith.constant 0 : i32
    %c0_i32_1 = arith.constant 0 : i32
    return %c0_i32, %c0_i32_0 : i32, i32
  }
  func.func @transform_4(%arg0: i32) -> (i32, i32) {
    %c0_i32 = arith.constant 0 : i32
    %c0_i32_0 = arith.constant 0 : i32
    %c0_i32_1 = arith.constant 0 : i32
    return %c0_i32, %c0_i32_0 : i32, i32
  }
  func.func @transform_5(%arg0: i32) -> (i32, i32) {
    %c0_i32 = arith.constant 0 : i32
    %c0_i32_0 = arith.constant 0 : i32
    %c0_i32_1 = arith.constant 0 : i32
    return %c0_i32, %c0_i32_0 : i32, i32
  }
  func.func @transform_6(%arg0: i32) -> (i32, i32) {
    %c0_i32 = arith.constant 0 : i32
    %c0_i32_0 = arith.constant 0 : i32
    %c0_i32_1 = arith.constant 0 : i32
    return %c0_i32, %c0_i32_0 : i32, i32
  }
  func.func @transform_7(%arg0: i32) -> (i32, i32) {
    %c0_i32 = arith.constant 0 : i32
    %c0_i32_0 = arith.constant 0 : i32
    %c0_i32_1 = arith.constant 0 : i32
    return %c0_i32, %c0_i32_0 : i32, i32
  }
  func.func @transform_8(%arg0: i32) -> (i32, i32) {
    %c0_i32 = arith.constant 0 : i32
    %c0_i32_0 = arith.constant 0 : i32
    %c0_i32_1 = arith.constant 0 : i32
    return %c0_i32, %c0_i32_0 : i32, i32
  }
  func.func @transform_9(%arg0: i32) -> (i32, i32) {
    %c0_i32 = arith.constant 0 : i32
    %c0_i32_0 = arith.constant 0 : i32
    %c0_i32_1 = arith.constant 0 : i32
    return %c0_i32, %c0_i32_0 : i32, i32
  }
  func.func @transform_10(%arg0: i32) -> (i32, i32) {
    %c0_i32 = arith.constant 0 : i32
    %c0_i32_0 = arith.constant 0 : i32
    %c0_i32_1 = arith.constant 0 : i32
    return %c0_i32, %c0_i32_0 : i32, i32
  }
  func.func @transform_11(%arg0: i32) -> (i32, i32) {
    %c0_i32 = arith.constant 0 : i32
    %c0_i32_0 = arith.constant 0 : i32
    %c0_i32_1 = arith.constant 0 : i32
    return %c0_i32, %c0_i32_0 : i32, i32
  }
  func.func @transform_12(%arg0: i32) -> (i32, i32) {
    %c0_i32 = arith.constant 0 : i32
    %c0_i32_0 = arith.constant 0 : i32
    return %arg0, %c0_i32 : i32, i32
  }
}

</mosaic_0001>

<bundles_post_ra>
// kernel: tpu_custom_call.1
= control target key start
LH: loop header
LB: loop body
LE: loop exit
PB: predicated region body
PF: predicated region fallthrough
CT: control target
= control target key end

     0   :  { %17 = vsyncpa [#allocation3], 0  ;;  %s946_s0 = inlined_call_operand.vmem [shape: f32[8,32], index: 0, kind: input, shape index: {}]   ;;  %s947_s1 = inlined_call_operand.vmem [shape: f32[128,128], index: 1, kind: input, shape index: {}]   ;;  %s948_s2 = inlined_call_operand.hbm [shape: f32[32,128], index: 2, kind: input, shape index: {}]   ;;  %s949_s3 = inlined_call_operand.vmem [shape: f32[1,128], index: 3, kind: input, shape index: {}]   ;;  %s950_s4 = inlined_call_operand.hbm [shape: f32[1,128], index: 4, kind: input, shape index: {}]   ;;  %s951_s5 = inlined_call_operand.hbm [shape: f32[1,128], index: 5, kind: input, shape index: {}]   ;;  %s952_s6 = inlined_call_operand.hbm [shape: f32[128,128], index: 6, kind: input, shape index: {}]   ;;  %s953_s7 = inlined_call_operand.hbm [shape: f32[1,128], index: 7, kind: input, shape index: {}]   ;;  %s954_s8 = inlined_call_operand.hbm [shape: f32[1,128], index: 8, kind: input, shape index: {}]   ;;  %s955_s9 = inlined_call_operand.hbm [shape: f32[1,128], index: 9, kind: input, shape index: {}]   ;;  %s956_s10 = inlined_call_operand.vmem [shape: f32[128,8], index: 10, kind: input, shape index: {}]   ;;  %s957_s11 = inlined_call_operand.hbm [shape: f32[1,8], index: 11, kind: input, shape index: {}]   ;;  %s958_s12 = inlined_call_operand.hbm [shape: f32[8,8], index: 12, kind: output, shape index: {}]  }
   0x1   :  { %18 = vsyncpa [#allocation6], 0 }
   0x2   :  { %19 = vsyncpa [#allocation9], 0 }
   0x3   :  { %20 = vsyncpa [#allocation12], 0 }
   0x4   :  { %21 = vsyncpa [#allocation15], 0  ;;  %s47_s23 = sshll.u32 %s950_s4, 4  ;;  %s48_s23 = int_to_ptr.hbm [resolvable:$true] %s47_s23 }
   0x5   :  { %22 = vsyncpa [#allocation4], 0  ;;  %s708_s24 = smov [#allocation5]   ;;  %s68_s28 = sshll.u32 %s952_s6, 4  ;;  %s69_s28 = int_to_ptr.hbm [resolvable:$true] %s68_s28 }
   0x6   :  { %s49_s25 = sshll.u32 %s708_s24, 4  ;;  %s709_s29 = smov [#allocation8]   ;;  %s50_s25 = int_to_ptr.vmem [resolvable:$true] %s49_s25 }
   0x7   :  { %52 = dma.hbm_to_vmem [thread:$0]  %s48_s23, 16, %s50_s25, [#allocation6]  }
   0x8   :  { %s70_s30 = sshll.u32 %s709_s29, 4  ;;  %s93_s15 = sshll.u32 %s954_s8, 4  ;;  %s71_s30 = int_to_ptr.vmem [resolvable:$true] %s70_s30  ;;  %s94_s15 = int_to_ptr.hbm [resolvable:$true] %s93_s15 }
   0x9   :  { %s710_s4 = smov 128   ;;  %s711_s16 = smov 8  }
   0xa   :  { %76 = dma.hbm_to_vmem [thread:$0]  %s69_s28, 2048, %s71_s30, [#allocation9], %s710_s4, %s710_s4, %s711_s16  }
   0xb   :  { %s31_s19 = sshll.u32 %s948_s2, 4  ;;  %s712_s20 = smov [#allocation11]   ;;  %s32_s19 = int_to_ptr.hbm [resolvable:$true] %s31_s19 }
   0xc   :  { %s95_s21 = sshll.u32 %s712_s20, 4  ;;  %s713_s6 = smov [#allocation2]   ;;  %s96_s21 = int_to_ptr.vmem [resolvable:$true] %s95_s21 }
   0xd   :  { %98 = dma.hbm_to_vmem [thread:$0]  %s94_s15, 16, %s96_s21, [#allocation12]  }
   0xe   :  { %s33_s22 = sshll.u32 %s713_s6, 4  ;;  %s58_s8 = sshll.u32 %s951_s5, 4  ;;  %s34_s22 = int_to_ptr.vmem [resolvable:$true] %s33_s22  ;;  %s59_s8 = int_to_ptr.hbm [resolvable:$true] %s58_s8 }
   0xf   :  { %39 = dma.hbm_to_vmem [thread:$0]  %s32_s19, 512, %s34_s22, [#allocation3], %s710_s4, %s710_s4, %s711_s16  }
  0x10   :  { %s82_s27 = sshll.u32 %s953_s7, 4  ;;  %s714_s28 = smov [#allocation7]   ;;  %s83_s27 = int_to_ptr.hbm [resolvable:$true] %s82_s27 }
  0x11   :  { %s60_s2 = sshll.u32 %s714_s28, 4  ;;  %s715_s29 = smov [#allocation10]   ;;  %s61_s2 = int_to_ptr.vmem [resolvable:$true] %s60_s2 }
  0x12   :  { %63 = dma.hbm_to_vmem [thread:$0]  %s59_s8, 16, %s61_s2, [#allocation6]  }
  0x13   :  { %s84_s30 = sshll.u32 %s715_s29, 4  ;;  %s104_s15 = sshll.u32 %s955_s9, 4  ;;  %s85_s30 = int_to_ptr.vmem [resolvable:$true] %s84_s30  ;;  %s105_s15 = int_to_ptr.hbm [resolvable:$true] %s104_s15 }
  0x14   :  { %87 = dma.hbm_to_vmem [thread:$0]  %s83_s27, 16, %s85_s30, [#allocation9]  }
  0x15   :  { %s117_s16 = sshll.u32 %s957_s11, 4  ;;  %s716_s17 = smov [#allocation13]   ;;  %s118_s16 = int_to_ptr.hbm [resolvable:$true] %s117_s16 }
  0x16   :  { %s106_s7 = sshll.u32 %s716_s17, 4  ;;  %s717_s18 = smov [#allocation14]   ;;  %s107_s7 = int_to_ptr.vmem [resolvable:$true] %s106_s7 }
  0x17   :  { %109 = dma.hbm_to_vmem [thread:$0]  %s105_s15, 16, %s107_s7, [#allocation12]  }
  0x18   :  { %s119_s19 = sshll.u32 %s717_s18, 4  ;;  %s120_s19 = int_to_ptr.vmem [resolvable:$true] %s119_s19 }
  0x19   :  { %122 = dma.hbm_to_vmem [thread:$0]  %s118_s16, 16, %s120_s19, [#allocation15]  }
  0x1a   :  { %696 = dma.done.wait [#allocation3], 512  }
  0x1b   :  { %697 = vsyncadd [#allocation3], 4294966784 }
  0x1c   :  { %698 = dma.done.wait [#allocation6], 32  }
  0x1d   :  { %699 = vsyncadd [#allocation6], 4294967264 }
  0x1e   :  { %700 = dma.done.wait [#allocation9], 2064  }
  0x1f   :  { %701 = vsyncadd [#allocation9], 4294965232 }
  0x20   :  { %702 = dma.done.wait [#allocation12], 32  }
  0x21   :  { %703 = vsyncadd [#allocation12], 4294967264 }
  0x22   :  { %704 = dma.done.wait [#allocation15], 16  }
  0x23   :  { %705 = vsyncadd [#allocation15], 4294967280  ;;  %v169_v0 = vld [vmem:[#allocation2 + $0x18] sm:$0xff]  ;;  %v168_v1 = vld [vmem:[#allocation2 + $0x10] sm:$0xff]  ;;  %vm174_vm0 = vcmask 261120   ;;  %v156_v24 = vlaneseq  ;;  %v718_v26 = vmov 0.0  }
  0x24   :  { %190 = vmatpush.msra.mxu0 %v169_v0  ;;  %v213_v2 = vld [vmem:[%s947_s1 + $0x78] sm:$0xff]  ;;  %v167_v3 = vld [vmem:[#allocation2 + $0x8] sm:$0xff]  ;;  %v212_v4 = vld [vmem:[%s947_s1 + $0x70] sm:$0xff]  ;;  %s437_s2 = sshll.u32 %s958_s12, 4  ;;  %s438_s2 = int_to_ptr.hbm [resolvable:$true] %s437_s2 }
  0x25   :  { %214 = vmatpush.msra.mxu1 %v213_v2  ;;  %322 = vmatpush.msra.mxu3 %v213_v2  ;;  %v211_v5 = vld [vmem:[%s947_s1 + $0x68] sm:$0xff]  ;;  %v166_v6 = vld [vmem:[#allocation2] sm:$0xff]  ;;  %v209_v9 = vld [vmem:[%s947_s1 + $0x58] sm:$0xff]  ;;  %v863_v25 = vand.u32 127, %v156_v24 }
  0x26   :  { %191 = vmatpush.msra.mxu0 %v168_v1  ;;  %v155_v7 = vld [vmem:[%s946_s0] sm:$0xff]  ;;  %v208_v10 = vld [vmem:[%s947_s1 + $0x50] sm:$0xff]  ;;  %v207_v11 = vld [vmem:[%s947_s1 + $0x48] sm:$0xff] }
  0x27   :  { %215 = vmatpush.msra.mxu1 %v212_v4  ;;  %323 = vmatpush.msra.mxu3 %v212_v4  ;;  %v210_v8 = vld [vmem:[%s947_s1 + $0x60] sm:$0xff]  ;;  %v205_v13 = vld [vmem:[%s947_s1 + $0x38] sm:$0xff]  ;;  %v204_v14 = vld [vmem:[%s947_s1 + $0x30] sm:$0xff]  ;;  %vm160_vm1 = vcmp.ge.s32.totalorder %v863_v25, 64  ;;  %vm161_vm2 = vcmp.lt.s32.totalorder %v863_v25, 96  ;;  %vm159_vm3 = vcmp.lt.s32.totalorder %v863_v25, 32 }
  0x28   :  { %192 = vmatpush.msra.mxu0 %v167_v3  ;;  %v206_v12 = vld [vmem:[%s947_s1 + $0x40] sm:$0xff]  ;;  %v203_v15 = vld [vmem:[%s947_s1 + $0x28] sm:$0xff]  ;;  %v201_v17 = vld [vmem:[%s947_s1 + $0x18] sm:$0xff]  ;;  %vm158_vm6 = vcmp.lt.s32.totalorder %v863_v25, 64 }
  0x29   :  { %216 = vmatpush.msra.mxu1 %v211_v5  ;;  %324 = vmatpush.msra.mxu3 %v211_v5  ;;  %v202_v16 = vld [vmem:[%s947_s1 + $0x20] sm:$0xff]  ;;  %v200_v18 = vld [vmem:[%s947_s1 + $0x10] sm:$0xff]  ;;  %v199_v19 = vld [vmem:[%s947_s1 + $0x8] sm:$0xff] }
  0x2a   :  { %193 = vmatpush.msra.mxu0 %v166_v6  ;;  %v198_v20 = vld [vmem:[%s947_s1] sm:$0xff]  ;;  %vm162_vm4 = vmand %vm160_vm1, %vm161_vm2  ;;  %v296_v35 = vld [vmem:[#allocation8 + $0x70] sm:$0xff] }
  0x2b   :  { %452 = vmatmul.msk.f32.vlgmr.msra.gmra.mxu0 %vm174_vm0, %v155_v7  ;;  %217 = vmatpush.msra.mxu1 %v210_v8  ;;  %v465_v21 = vld [vmem:[%s949_s3] ss:$0 sm:$0xff]  ;;  %vm163_vm5 = vmor %vm159_vm3, %vm162_vm4  ;;  %v295_v36 = vld [vmem:[#allocation8 + $0x68] sm:$0xff]  ;;  %vm428_vm3 = vcmask 64512  }
  0x2c   :  { %325 = vmatpush.msra.mxu3 %v210_v8  ;;  %v868_v27 = vsel %vm163_vm5, 1.0, %v718_v26  ;;  %v297_v34 = vld [vmem:[#allocation8 + $0x78] sm:$0xff]  ;;  %v294_v37 = vld [vmem:[#allocation8 + $0x60] sm:$0xff]  ;;  %v292_v39 = vld [vmem:[#allocation8 + $0x50] sm:$0xff] }
  0x2d   :  { %218 = vmatpush.msra.mxu1 %v209_v9  ;;  %302 = vmatpush.msra.mxu2 %v297_v34  ;;  %v293_v38 = vld [vmem:[#allocation8 + $0x58] sm:$0xff]  ;;  %v291_v40 = vld [vmem:[#allocation8 + $0x48] sm:$0xff]  ;;  %v290_v41 = vld [vmem:[#allocation8 + $0x40] sm:$0xff] }
  0x2e   :  { %326 = vmatpush.msra.mxu3 %v209_v9  ;;  %v289_v42 = vld [vmem:[#allocation8 + $0x38] sm:$0xff]  ;;  %v288_v43 = vld [vmem:[#allocation8 + $0x30] sm:$0xff]  ;;  %v287_v44 = vld [vmem:[#allocation8 + $0x28] sm:$0xff] }
  0x2f   :  { %219 = vmatpush.msra.mxu1 %v208_v10  ;;  %303 = vmatpush.msra.mxu2 %v296_v35  ;;  %v286_v45 = vld [vmem:[#allocation8 + $0x20] sm:$0xff]  ;;  %v285_v46 = vld [vmem:[#allocation8 + $0x18] sm:$0xff]  ;;  %v284_v48 = vld [vmem:[#allocation8 + $0x10] sm:$0xff] }
  0x30   :  { %327 = vmatpush.msra.mxu3 %v208_v10  ;;  %v283_v50 = vld [vmem:[#allocation8 + $0x8] sm:$0xff]  ;;  %v282_v52 = vld [vmem:[#allocation8] sm:$0xff]  ;;  %v466_v6 = vld [vmem:[#allocation5] ss:$0 sm:$0xff] }
  0x31   :  { %220 = vmatpush.msra.mxu1 %v207_v11  ;;  %304 = vmatpush.msra.mxu2 %v295_v36  ;;  %v467_v9 = vld [vmem:[#allocation7] ss:$0 sm:$0xff]  ;;  %v401_v24 = vld [vmem:[%s956_s10 + $0x68] sm:$0xff]  ;;  %v391_v35 = vld [vmem:[%s956_s10 + $0x18] sm:$0xff] }
  0x32   :  { %328 = vmatpush.msra.mxu3 %v207_v11  ;;  %v400_v26 = vld [vmem:[%s956_s10 + $0x60] sm:$0xff] }
  0x33   :  { %221 = vmatpush.msra.mxu1 %v206_v12  ;;  %305 = vmatpush.msra.mxu2 %v294_v37  ;;  %v392_v34 = vld [vmem:[%s956_s10 + $0x20] sm:$0xff]  ;;  %v390_v37 = vld [vmem:[%s956_s10 + $0x10] sm:$0xff] }
  0x34   :  { %329 = vmatpush.msra.mxu3 %v206_v12 }
  0x35   :  { %222 = vmatpush.msra.mxu1 %v205_v13  ;;  %306 = vmatpush.msra.mxu2 %v293_v38 }
  0x36   :  { %330 = vmatpush.msra.mxu3 %v205_v13  ;;  %v468_v13 = vld [vmem:[#allocation10] ss:$0 sm:$0xff] }
  0x37   :  { %223 = vmatpush.msra.mxu1 %v204_v14  ;;  %307 = vmatpush.msra.mxu2 %v292_v39  ;;  %v389_v39 = vld [vmem:[%s956_s10 + $0x8] sm:$0xff] }
  0x38   :  { %331 = vmatpush.msra.mxu3 %v204_v14 }
  0x39   :  { %224 = vmatpush.msra.mxu1 %v203_v15  ;;  %308 = vmatpush.msra.mxu2 %v291_v40 }
  0x3a   :  { %332 = vmatpush.msra.mxu3 %v203_v15 }
  0x3b   :  { %225 = vmatpush.msra.mxu1 %v202_v16  ;;  %309 = vmatpush.msra.mxu2 %v290_v41  ;;  %v388_v41 = vld [vmem:[%s956_s10] sm:$0xff] }
  0x3c   :  { %333 = vmatpush.msra.mxu3 %v202_v16 }
  0x3d   :  { %226 = vmatpush.msra.mxu1 %v201_v17  ;;  %310 = vmatpush.msra.mxu2 %v289_v42 }
  0x3e   :  { %334 = vmatpush.msra.mxu3 %v201_v17 }
  0x3f   :  { %227 = vmatpush.msra.mxu1 %v200_v18  ;;  %311 = vmatpush.msra.mxu2 %v288_v43 }
  0x40   :  { %335 = vmatpush.msra.mxu3 %v200_v18 }
  0x41   :  { %228 = vmatpush.msra.mxu1 %v199_v19  ;;  %312 = vmatpush.msra.mxu2 %v287_v44 }
  0x42   :  { %336 = vmatpush.msra.mxu3 %v199_v19 }
  0x43   :  { %229 = vmatpush.msra.mxu1 %v198_v20  ;;  %313 = vmatpush.msra.mxu2 %v286_v45 }
  0x44   :  { %337 = vmatpush.msra.mxu3 %v198_v20 }
  0x45   :  { %314 = vmatpush.msra.mxu2 %v285_v46 }
  0x47   :  { %315 = vmatpush.msra.mxu2 %v284_v48 }
  0x49   :  { %316 = vmatpush.msra.mxu2 %v283_v50 }
  0x4b   :  { %317 = vmatpush.msra.mxu2 %v282_v52 }
  0xa8   :  { %v195_v22 = vpop.f32.mrf.mxu0 }
  0xa9   :  { %v196_v23 = vadd.f32 %v465_v21, %v195_v22  ;;  %v403_v22 = vld [vmem:[%s956_s10 + $0x78] sm:$0xff] }
  0xaa   :  { %408 = vmatpush.msrb.mxu0 %v403_v22 }
  0xab   :  { %230 = vmatmul.f32.vlgmr.msra.gmra.mxu1 %v196_v23 }
 0x128   :  { %v231_v28 = vpop.f32.mrf.mxu1 }
 0x129   :  { %v234_v29 = vsub.f32 %v196_v23, %v231_v28  ;;  %v402_v23 = vld [vmem:[%s956_s10 + $0x70] sm:$0xff] }
 0x12a   :  { %409 = vmatpush.msrb.mxu0 %v402_v23  ;;  %v398_v28 = vld [vmem:[%s956_s10 + $0x50] sm:$0xff] }
 0x12b   :  { %v871_v30 = vmul.f32 %v868_v27, %v234_v29  ;;  %v397_v29 = vld [vmem:[%s956_s10 + $0x48] sm:$0xff] }
 0x12c   :  { %410 = vmatpush.msrb.mxu0 %v401_v24 }
 0x12d   :  { %v236_v31 = vmul.f32 %v871_v30, %v871_v30 }
 0x12e   :  { %411 = vmatpush.msrb.mxu0 %v400_v26 }
 0x12f   :  { %v239_v32 = vsel %vm158_vm6, %v236_v31, 0.0  ;;  %v242_v33 = vsel %vm158_vm6, 0.0, %v236_v31  ;;  %v395_v31 = vld [vmem:[%s956_s10 + $0x38] sm:$0xff] }
 0x130   :  { %240 = vadd.xlane.f32.xlu0 %v239_v32  ;;  %v394_v32 = vld [vmem:[%s956_s10 + $0x30] sm:$0xff] }
 0x138   :  { %243 = vadd.xlane.f32.xlu0 %v242_v33  ;;  %v393_v33 = vld [vmem:[%s956_s10 + $0x28] sm:$0xff] }
 0x1a3   :  { %v241_v47 = vpop.xlane.xlu0 %240 }
 0x1a4   :  { %v245_v49 = vmul.f32 0.03125, %v241_v47 }
 0x1a6   :  { %v246_v51 = vadd.f32 1e-05, %v245_v49 }
 0x1a8   :  { %472 = vrsqrt.f32 %v246_v51  ;;  %vm253_vm9 = vweird.f32 %v246_v51 }
 0x1ab   :  { %v244_v53 = vpop.xlane.xlu0 %243 }
 0x1ac   :  { %v257_v54 = vmul.f32 0.03125, %v244_v53 }
 0x1ae   :  { %v473_v55 = vpop.eup %472  ;;  %v258_v56 = vadd.f32 1e-05, %v257_v54 }
 0x1af   :  { %v248_v57 = vmul.f32 %v473_v55, %v246_v51  ;;  %vm254_vm7 = vweird.f32 %v473_v55 }
 0x1b0   :  { %474 = vrsqrt.f32 %v258_v56  ;;  %vm255_vm10 = vmor %vm253_vm9, %vm254_vm7  ;;  %vm265_vm11 = vweird.f32 %v258_v56 }
 0x1b1   :  { %v249_v58 = vmul.f32 %v473_v55, %v248_v57 }
 0x1b3   :  { %v250_v59 = vmul.f32 0.5, %v249_v58 }
 0x1b5   :  { %v251_v62 = vsub.f32 1.5, %v250_v59  ;;  %v469_v59 = vld [vmem:[#allocation11] ss:$0 sm:$0xff] }
 0x1b6   :  { %v475_v60 = vpop.eup %474 }
 0x1b7   :  { %v260_v61 = vmul.f32 %v475_v60, %v258_v56  ;;  %v252_v1 = vmul.f32 %v473_v55, %v251_v62  ;;  %vm266_vm8 = vweird.f32 %v475_v60  ;;  %v470_v62 = vld [vmem:[#allocation13] ss:$0 sm:$0xff] }
 0x1b8   :  { %vm267_vm12 = vmor %vm265_vm11, %vm266_vm8 }
 0x1b9   :  { %v261_v63 = vmul.f32 %v475_v60, %v260_v61  ;;  %v256_v4 = vsel %vm255_vm10, %v473_v55, %v252_v1 }
 0x1bb   :  { %v262_v0 = vmul.f32 0.5, %v261_v63 }
 0x1bd   :  { %v263_v2 = vsub.f32 1.5, %v262_v0 }
 0x1bf   :  { %v264_v3 = vmul.f32 %v475_v60, %v263_v2  ;;  %v471_v2 = vld [vmem:[#allocation14] ss:$0 sm:$0xff] }
 0x1c1   :  { %v268_v5 = vsel %vm267_vm12, %v475_v60, %v264_v3 }
 0x1c2   :  { %v269_v7 = vsel %vm158_vm6, %v256_v4, %v268_v5 }
 0x1c3   :  { %v270_v8 = vmul.f32 %v269_v7, %v871_v30  ;;  %v396_v30 = vld [vmem:[%s956_s10 + $0x40] sm:$0xff] }
 0x1c5   :  { %v275_v10 = vmul.f32 %v466_v6, %v270_v8 }
 0x1c7   :  { %v280_v11 = vadd.f32 %v467_v9, %v275_v10 }
 0x1c9   :  { %v281_v12 = vmax.f32 %v280_v11, 0.0 }
 0x1cb   :  { %318 = vmatmul.f32.vlgmr.msra.gmra.mxu2 %v281_v12 }
 0x24e   :  { %v319_v14 = vpop.f32.mrf.mxu2 }
 0x24f   :  { %v320_v15 = vadd.f32 %v468_v13, %v319_v14 }
 0x251   :  { %338 = vmatmul.f32.vlgmr.msra.gmra.mxu3 %v320_v15 }
 0x2d4   :  { %v339_v16 = vpop.f32.mrf.mxu3 }
 0x2d5   :  { %v342_v17 = vsub.f32 %v320_v15, %v339_v16 }
 0x2d7   :  { %v884_v18 = vmul.f32 %v868_v27, %v342_v17  ;;  %v399_v27 = vld [vmem:[%s956_s10 + $0x58] sm:$0xff]  ;;  %s719_s10 = smov [#allocation16]  }
 0x2d8   :  { %412 = vmatpush.msrb.mxu0 %v399_v27  ;;  %s435_s26 = sshll.u32 %s719_s10, 4  ;;  %s436_s26 = int_to_ptr.vmem [resolvable:$true] %s435_s26 }
 0x2d9   :  { %v344_v19 = vmul.f32 %v884_v18, %v884_v18 }
 0x2da   :  { %413 = vmatpush.msrb.mxu0 %v398_v28 }
 0x2db   :  { %v345_v20 = vsel %vm158_vm6, %v344_v19, 0.0  ;;  %v348_v21 = vsel %vm158_vm6, 0.0, %v344_v19 }
 0x2dc   :  { %346 = vadd.xlane.f32.xlu1 %v345_v20  ;;  %414 = vmatpush.msrb.mxu0 %v397_v29 }
 0x2de   :  { %415 = vmatpush.msrb.mxu0 %v396_v30 }
 0x2e0   :  { %416 = vmatpush.msrb.mxu0 %v395_v31 }
 0x2e2   :  { %417 = vmatpush.msrb.mxu0 %v394_v32 }
 0x2e4   :  { %349 = vadd.xlane.f32.xlu1 %v348_v21  ;;  %418 = vmatpush.msrb.mxu0 %v393_v33 }
 0x2e6   :  { %419 = vmatpush.msrb.mxu0 %v392_v34 }
 0x2e8   :  { %420 = vmatpush.msrb.mxu0 %v391_v35 }
 0x2ea   :  { %421 = vmatpush.msrb.mxu0 %v390_v37 }
 0x2ec   :  { %422 = vmatpush.msrb.mxu0 %v389_v39 }
 0x2ee   :  { %423 = vmatpush.msrb.mxu0 %v388_v41 }
 0x34f   :  { %v347_v36 = vpop.xlane.xlu1 %346 }
 0x350   :  { %v351_v38 = vmul.f32 0.03125, %v347_v36 }
 0x352   :  { %v352_v40 = vadd.f32 1e-05, %v351_v38 }
 0x354   :  { %476 = vrsqrt.f32 %v352_v40  ;;  %vm359_vm15 = vweird.f32 %v352_v40 }
 0x357   :  { %v350_v42 = vpop.xlane.xlu1 %349 }
 0x358   :  { %v363_v43 = vmul.f32 0.03125, %v350_v42 }
 0x35a   :  { %v477_v44 = vpop.eup %476  ;;  %v364_v45 = vadd.f32 1e-05, %v363_v43 }
 0x35b   :  { %v354_v46 = vmul.f32 %v477_v44, %v352_v40  ;;  %vm360_vm13 = vweird.f32 %v477_v44 }
 0x35c   :  { %478 = vrsqrt.f32 %v364_v45  ;;  %vm361_vm0 = vmor %vm359_vm15, %vm360_vm13  ;;  %vm371_vm1 = vweird.f32 %v364_v45 }
 0x35d   :  { %v355_v47 = vmul.f32 %v477_v44, %v354_v46 }
 0x35f   :  { %v356_v48 = vmul.f32 0.5, %v355_v47 }
 0x361   :  { %v357_v51 = vsub.f32 1.5, %v356_v48 }
 0x362   :  { %v479_v49 = vpop.eup %478 }
 0x363   :  { %v366_v50 = vmul.f32 %v479_v49, %v364_v45  ;;  %v358_v54 = vmul.f32 %v477_v44, %v357_v51  ;;  %vm372_vm14 = vweird.f32 %v479_v49 }
 0x364   :  { %vm373_vm2 = vmor %vm371_vm1, %vm372_vm14 }
 0x365   :  { %v367_v52 = vmul.f32 %v479_v49, %v366_v50  ;;  %v362_v57 = vsel %vm361_vm0, %v477_v44, %v358_v54 }
 0x367   :  { %v368_v53 = vmul.f32 0.5, %v367_v52 }
 0x369   :  { %v369_v55 = vsub.f32 1.5, %v368_v53 }
 0x36b   :  { %v370_v56 = vmul.f32 %v479_v49, %v369_v55 }
 0x36d   :  { %v374_v58 = vsel %vm373_vm2, %v479_v49, %v370_v56 }
 0x36e   :  { %v375_v60 = vsel %vm158_vm6, %v362_v57, %v374_v58 }
 0x36f   :  { %v376_v61 = vmul.f32 %v375_v60, %v884_v18 }
 0x371   :  { %v381_v63 = vmul.f32 %v469_v59, %v376_v61 }
 0x373   :  { %v386_v0 = vadd.f32 %v470_v62, %v381_v63 }
 0x375   :  { %v387_v1 = vmax.f32 %v386_v0, 0.0 }
 0x377   :  { %424 = vmatmul.f32.vlgmr.msrb.gmra.mxu0 %v387_v1 }
 0x3f4   :  { %v425_v3 = vpop.f32.mrf.mxu0 }
 0x3f5   :  { %v426_v4 = vadd.f32 %v471_v2, %v425_v3 }
 0x3f7   :  { %429 = vst.msk [vmem:[#allocation16] sm:$0xff] %vm428_vm3, %v426_v4 }
 0x3f8   :  { %440 = dma.vmem_to_hbm [thread:$0]  %s436_s26, 128, %s438_s2, [#allocation4]  }
 0x3f9   :  { %706 = dma.done.wait [#allocation4], 128  }
 0x3fa   :  { %707 = vsyncadd [#allocation4], 4294967168 }
 0x3fb   :  { %445 = vsyncpa [#allocation3], 1 }
 0x3fc   :  { %446 = vsyncpa [#allocation6], 1 }
 0x3fd   :  { %447 = vsyncpa [#allocation9], 1 }
 0x3fe   :  { %448 = vsyncpa [#allocation12], 1 }
 0x3ff   :  { %449 = vsyncpa [#allocation15], 1 }
 0x400   :  { %450 = vsyncpa [#allocation4], 1 }

</bundles_post_ra>
